<compile_context>
chip_gen: v7x
topology: tpu7x:2x2x1
jax: 0.10.0
libtpu: 0.0.40
codegen_flags: <defaults>
</compile_context>

<pallas_src>
import functools
import math

import jax
import jax.numpy as jnp
from jax import lax
from jax.experimental import pallas as pl
from jax.experimental.pallas import tpu as pltpu

SIGMA = 0.1

_LANE_COLS = 512       # lane-dense last dim (multiple of 128)
_MAX_TILE_ROWS = 512   # 512 x 512 f32 = 1 MiB per block buffer (v7x-safe)


def _i32(v):
    """Hex constant -> int32 (two's complement), evaluated at trace time."""
    v &= 0xFFFFFFFF
    return jnp.int32(v - (1 << 32) if v >= (1 << 31) else v)


def _mix32(x):
    """lowbias32 integer finalizer (good avalanche on sequential counters)."""
    x = x ^ (x >> 16)
    x = x * jnp.uint32(0x7FEB352D)
    x = x ^ (x >> 15)
    x = x * jnp.uint32(0x846CA68B)
    x = x ^ (x >> 16)
    return x


def _gaussian_noise_kernel(seed_ref, x_ref, o_ref, *, sigma):
    rows, cols = x_ref.shape  # static block shape

    # Global flat element index of every element in this tile (int32).
    row_off = pl.program_id(0) * rows
    r_idx = lax.broadcasted_iota(jnp.int32, (rows, cols), 0)
    c_idx = lax.broadcasted_iota(jnp.int32, (rows, cols), 1)
    flat = (row_off + r_idx) * cols + c_idx

    # Per-element, seed-dependent counter (wrapping int32 arithmetic), then
    # reinterpret as uint32 for logical-shift hashing.
    seed_mix = seed_ref[0] * _i32(0x9E3779B9)
    c0 = lax.bitcast_convert_type(flat * 2 + seed_mix, jnp.uint32)

    # Two decorrelated 32-bit draws per element (stateless, counter-based).
    a = _mix32(c0)
    b = _mix32(c0 + jnp.uint32(1))

    # Approximate standard normal: sum of four 16-bit uniforms (CLT /
    # Irwin-Hall n=4), rescaled to unit variance.  Transcendental-free.
    m16 = jnp.uint32(0xFFFF)
    s_u32 = (a & m16) + (a >> 16) + (b & m16) + (b >> 16)       # < 2^18
    s_f = lax.bitcast_convert_type(s_u32, jnp.int32).astype(jnp.float32)
    z = (s_f - jnp.float32(131070.0)) * jnp.float32(math.sqrt(3.0) / 65536.0)

    # out = x + z * (sigma * x)  ==  x * (1 + sigma * z)
    x = x_ref[...].astype(jnp.float32)
    o_ref[...] = (x * (jnp.float32(1.0) + jnp.float32(sigma) * z)).astype(o_ref.dtype)


def gaussian_noise(x, seed, *, sigma=SIGMA, training=True):
    """Pallas implementation of GaussianNoise.forward (elementwise, any shape)."""
    if (not training) or sigma == 0:
        return x

    orig_shape = x.shape
    orig_dtype = x.dtype
    n = x.size

    # Lane-dense 2D slab: (rows, 512); pad the tail only when needed.
    n_pad = pl.cdiv(n, _LANE_COLS) * _LANE_COLS
    flat = x.reshape(-1)
    if n_pad != n:
        flat = jnp.pad(flat, (0, n_pad - n))
    x2d = flat.reshape(-1, _LANE_COLS)
    rows = x2d.shape[0]
    tile_rows = min(_MAX_TILE_ROWS, rows)
    grid = (pl.cdiv(rows, tile_rows),)

    seed_arr = jnp.asarray([seed], dtype=jnp.int32)

    compiler_params = None
    if jax.default_backend() == "tpu":
        compiler_params = pltpu.CompilerParams(
            dimension_semantics=("parallel",),      # 2x on v7x (2 TCs/chip)
            vmem_limit_bytes=32 * 1024 * 1024,      # safe on v7x's 64 MiB VMEM
        )

    out2d = pl.pallas_call(
        functools.partial(_gaussian_noise_kernel, sigma=float(sigma)),
        out_shape=jax.ShapeDtypeStruct(x2d.shape, orig_dtype),
        grid=grid,
        in_specs=[
            pl.BlockSpec(memory_space=pltpu.MemorySpace.SMEM),        # seed
            pl.BlockSpec((tile_rows, _LANE_COLS), lambda i: (i, 0)),  # x tile
        ],
        out_specs=pl.BlockSpec((tile_rows, _LANE_COLS), lambda i: (i, 0)),
        compiler_params=compiler_params,
    )(seed_arr, x2d)

    out = out2d.reshape(-1)
    if n_pad != n:
        out = out[:n]
    return out.reshape(orig_shape)


if __name__ == "__main__":
    key = jax.random.PRNGKey(0)
    # Small CIFAR-like activation: N=2, C=4, H=W=16 (NCHW).
    x = jax.random.normal(key, (2, 4, 16, 16), dtype=jnp.float32)

    y = jax.block_until_ready(gaussian_noise(x, seed=0, sigma=SIGMA, training=True))

    # Shape / dtype preserved, values finite.
    assert y.shape == x.shape and y.dtype == x.dtype
    assert bool(jnp.isfinite(y).all())

    # Recover injected relative noise: y = x*(1 + sigma*z)  =>  z = (y/x - 1)/sigma
    z = jnp.where(x == 0, 0.0, (y / x - 1.0) / SIGMA)
    assert bool(jnp.isfinite(z).all())
    assert abs(float(jnp.mean(z))) < 0.15          # ~N(0,1) noise
    assert 0.8 < float(jnp.std(z)) < 1.2

    # Different seeds give different noise.
    y2 = gaussian_noise(x, seed=1, sigma=SIGMA, training=True)
    assert not bool(jnp.array_equal(y, y2))

    # Eval mode / sigma == 0 must be identity.
    y_eval = gaussian_noise(x, seed=0, sigma=SIGMA, training=False)
    assert bool(jnp.array_equal(y_eval, x))

    print("KERNEL_OK")
</pallas_src>

<mosaic_0001>
module attributes {stable_mosaic.version = 11 : i64} {
  func.func @_gaussian_noise_kernel(%arg0: i32, %arg1: memref<1xi32, #tpu.memory_space<smem>>, %arg2: memref<4x512xf32, #tpu.memory_space<vmem>>, %arg3: memref<4x512xf32, #tpu.memory_space<vmem>>) attributes {dimension_semantics = [#tpu.dimension_semantics<arbitrary>], iteration_bounds = array<i64: 1>, scalar_prefetch = 0 : i64, scratch_operands = 0 : i64, tpu.core_type = #tpu.core_type<tc>, window_params = [{transform_indices = @transform_0, window_bounds = array<i64: 1>}, {transform_indices = @transform_1, window_bounds = array<i64: 4, 512>}, {transform_indices = @transform_2, window_bounds = array<i64: 4, 512>}]} {
    %c4_i32 = arith.constant 4 : i32
    %0 = arith.muli %arg0, %c4_i32 : i32
    %1 = tpu.iota {dimensions = array<i32: 0>} : vector<4x512xi32>
    %2 = tpu.iota {dimensions = array<i32: 1>} : vector<4x512xi32>
    %3 = vector.broadcast %0 : i32 to vector<4x512xi32>
    %4 = arith.addi %3, %1 : vector<4x512xi32>
    %c512_i32 = arith.constant 512 : i32
    %5 = vector.broadcast %c512_i32 : i32 to vector<4x512xi32>
    %6 = arith.muli %4, %5 : vector<4x512xi32>
    %7 = arith.addi %6, %2 : vector<4x512xi32>
    %c0 = arith.constant 0 : index
    %8 = memref.load %arg1[%c0] : memref<1xi32, #tpu.memory_space<smem>>
    %c-1640531527_i32 = arith.constant -1640531527 : i32
    %9 = arith.muli %8, %c-1640531527_i32 : i32
    %c2_i32 = arith.constant 2 : i32
    %10 = vector.broadcast %c2_i32 : i32 to vector<4x512xi32>
    %11 = arith.muli %7, %10 : vector<4x512xi32>
    %12 = vector.broadcast %9 : i32 to vector<4x512xi32>
    %13 = arith.addi %11, %12 : vector<4x512xi32>
    %14 = tpu.bitcast %13 : vector<4x512xi32> -> vector<4x512xi32>
    %c16_i32 = arith.constant 16 : i32
    %15 = vector.broadcast %c16_i32 : i32 to vector<4x512xi32>
    %16 = arith.shrui %14, %15 : vector<4x512xi32>
    %17 = arith.xori %14, %16 : vector<4x512xi32>
    %c2146121005_i32 = arith.constant 2146121005 : i32
    %18 = vector.broadcast %c2146121005_i32 : i32 to vector<4x512xi32>
    %19 = arith.muli %17, %18 : vector<4x512xi32>
    %c15_i32 = arith.constant 15 : i32
    %20 = vector.broadcast %c15_i32 : i32 to vector<4x512xi32>
    %21 = arith.shrui %19, %20 : vector<4x512xi32>
    %22 = arith.xori %19, %21 : vector<4x512xi32>
    %c-2073254261_i32 = arith.constant -2073254261 : i32
    %23 = vector.broadcast %c-2073254261_i32 : i32 to vector<4x512xi32>
    %24 = arith.muli %22, %23 : vector<4x512xi32>
    %c16_i32_0 = arith.constant 16 : i32
    %25 = vector.broadcast %c16_i32_0 : i32 to vector<4x512xi32>
    %26 = arith.shrui %24, %25 : vector<4x512xi32>
    %27 = arith.xori %24, %26 : vector<4x512xi32>
    %c1_i32 = arith.constant 1 : i32
    %28 = vector.broadcast %c1_i32 : i32 to vector<4x512xi32>
    %29 = arith.addi %14, %28 : vector<4x512xi32>
    %c16_i32_1 = arith.constant 16 : i32
    %30 = vector.broadcast %c16_i32_1 : i32 to vector<4x512xi32>
    %31 = arith.shrui %29, %30 : vector<4x512xi32>
    %32 = arith.xori %29, %31 : vector<4x512xi32>
    %c2146121005_i32_2 = arith.constant 2146121005 : i32
    %33 = vector.broadcast %c2146121005_i32_2 : i32 to vector<4x512xi32>
    %34 = arith.muli %32, %33 : vector<4x512xi32>
    %c15_i32_3 = arith.constant 15 : i32
    %35 = vector.broadcast %c15_i32_3 : i32 to vector<4x512xi32>
    %36 = arith.shrui %34, %35 : vector<4x512xi32>
    %37 = arith.xori %34, %36 : vector<4x512xi32>
    %c-2073254261_i32_4 = arith.constant -2073254261 : i32
    %38 = vector.broadcast %c-2073254261_i32_4 : i32 to vector<4x512xi32>
    %39 = arith.muli %37, %38 : vector<4x512xi32>
    %c16_i32_5 = arith.constant 16 : i32
    %40 = vector.broadcast %c16_i32_5 : i32 to vector<4x512xi32>
    %41 = arith.shrui %39, %40 : vector<4x512xi32>
    %42 = arith.xori %39, %41 : vector<4x512xi32>
    %c65535_i32 = arith.constant 65535 : i32
    %43 = vector.broadcast %c65535_i32 : i32 to vector<4x512xi32>
    %44 = arith.andi %27, %43 : vector<4x512xi32>
    %c16_i32_6 = arith.constant 16 : i32
    %45 = vector.broadcast %c16_i32_6 : i32 to vector<4x512xi32>
    %46 = arith.shrui %27, %45 : vector<4x512xi32>
    %47 = arith.addi %44, %46 : vector<4x512xi32>
    %c65535_i32_7 = arith.constant 65535 : i32
    %48 = vector.broadcast %c65535_i32_7 : i32 to vector<4x512xi32>
    %49 = arith.andi %42, %48 : vector<4x512xi32>
    %50 = arith.addi %47, %49 : vector<4x512xi32>
    %c16_i32_8 = arith.constant 16 : i32
    %51 = vector.broadcast %c16_i32_8 : i32 to vector<4x512xi32>
    %52 = arith.shrui %42, %51 : vector<4x512xi32>
    %53 = arith.addi %50, %52 : vector<4x512xi32>
    %54 = tpu.bitcast %53 : vector<4x512xi32> -> vector<4x512xi32>
    %55 = arith.sitofp %54 : vector<4x512xi32> to vector<4x512xf32>
    %cst = arith.constant 1.310700e+05 : f32
    %56 = vector.broadcast %cst : f32 to vector<4x512xf32>
    %57 = arith.subf %55, %56 : vector<4x512xf32>
    %cst_9 = arith.constant 2.64289974E-5 : f32
    %58 = vector.broadcast %cst_9 : f32 to vector<4x512xf32>
    %59 = arith.mulf %57, %58 : vector<4x512xf32>
    %c0_10 = arith.constant 0 : index
    %c0_11 = arith.constant 0 : index
    %60 = vector.load %arg2[%c0_10, %c0_11] : memref<4x512xf32, #tpu.memory_space<vmem>>, vector<4x512xf32>
    %cst_12 = arith.constant 1.000000e-01 : f32
    %61 = vector.broadcast %cst_12 : f32 to vector<4x512xf32>
    %62 = arith.mulf %61, %59 : vector<4x512xf32>
    %cst_13 = arith.constant 1.000000e+00 : f32
    %63 = vector.broadcast %cst_13 : f32 to vector<4x512xf32>
    %64 = arith.addf %63, %62 : vector<4x512xf32>
    %65 = arith.mulf %60, %64 : vector<4x512xf32>
    %c0_14 = arith.constant 0 : index
    %c0_15 = arith.constant 0 : index
    %66 = vector.load %arg3[%c0_14, %c0_15] : memref<4x512xf32, #tpu.memory_space<vmem>>, vector<4x512xf32>
    tpu.vector_store %arg3[%c0_14, %c0_15], %65 {strides = array<i32>} : memref<4x512xf32, #tpu.memory_space<vmem>>, vector<4x512xf32>,
    return
  }
  func.func @transform_0(%arg0: i32) -> i32 {
    %c0_i32 = arith.constant 0 : i32
    %c0_i32_0 = arith.constant 0 : i32
    return %c0_i32 : i32
  }
  func.func @transform_1(%arg0: i32) -> (i32, i32) {
    %c0_i32 = arith.constant 0 : i32
    %c0_i32_0 = arith.constant 0 : i32
    return %arg0, %c0_i32 : i32, i32
  }
  func.func @transform_2(%arg0: i32) -> (i32, i32) {
    %c0_i32 = arith.constant 0 : i32
    %c0_i32_0 = arith.constant 0 : i32
    return %arg0, %c0_i32 : i32, i32
  }
}

</mosaic_0001>

<bundles_post_ra>
// kernel: tpu_custom_call.1
= control target key start
LH: loop header
LB: loop body
LE: loop exit
PB: predicated region body
PF: predicated region fallthrough
CT: control target
= control target key end

     0   :  { %8 = vsyncpa [#allocation4], 0  ;;  %s294_s0 = inlined_call_operand.<no memory space> [shape: s32[1], index: 0, kind: input, shape index: {}]   ;;  %s295_s1 = inlined_call_operand.hbm [shape: f32[4,512], index: 1, kind: input, shape index: {}]   ;;  %s296_s2 = inlined_call_operand.hbm [shape: f32[4,512], index: 2, kind: output, shape index: {}]  }
   0x1   :  { %9 = vsyncpa [#allocation5], 0  ;;  %s250_s9 = smov [#allocation3]   ;;  %s202_s13 = scalar_lea.hbm %s295_s1, 256 }
   0x2   :  { %s18_s10 = sshll.u32 %s250_s9, 4  ;;  %p203_p0 = scmp.ne.s32.totalorder %s295_s1, %s202_s13  ;;  %s19_s10 = int_to_ptr.vmem [resolvable:$true] %s18_s10 }
   0x3   :  { %p206_p1 = scmp.lt.u32.totalorder %s202_s13, %s295_s1 }
   0x5   :  { %p208_p2 = pnand %p206_p1, %p203_p0 }
   0x7   :  { %211 = shalt.err (!%p208_p2)
}
   0x8   :  { %s212_s18 = scalar_lea.vmem %s19_s10, 256  ;;  %p217_p4 = scmp.lt.s32.totalorder %s19_s10, %s19_s10 }
   0x9   :  { %p213_p3 = scmp.ne.s32.totalorder %s19_s10, %s212_s18  ;;  %p218_p5 = scmp.lt.s32.totalorder %s212_s18, %s212_s18 }
   0xb   :  { %p219_p6 = por %p218_p5, %p217_p4 }
   0xd   :  { %p220_p7 = pnand %p219_p6, %p213_p3 }
   0xf   :  { %223 = shalt.err (!%p220_p7)
}
  0x10   :  { %21 = dma.hbm_to_vmem [thread:$0]  %s295_s1, 256, %s19_s10, [#allocation4]  }
  0x11   :  { %246 = dma.done.wait [#allocation4], 256  }
  0x12   :  { %247 = vsyncadd [#allocation4], 4294967040  ;;  %v26_v0 = vlaneseq  ;;  %s41_s23 = smul.u32 2654435769, %s294_s0  ;;  %s251_s0 = smov [#allocation6]  }
  0x13   :  { %s187_s1 = sshll.u32 %s251_s0, 4  ;;  %s188_s1 = int_to_ptr.vmem [resolvable:$true] %s187_s1 }
  0x14   :  { %v27_v1 = vshrl.u32 %v26_v0, 7  ;;  %v29_v2 = vand.u32 127, %v26_v0  ;;  %v46_v11 = vstv %s41_s23  ;;  %s224_s24 = scalar_lea.vmem %s188_s1, 256  ;;  %p229_p9 = scmp.lt.s32.totalorder %s188_s1, %s188_s1 }
  0x15   :  { %p225_p8 = scmp.ne.s32.totalorder %s188_s1, %s224_s24  ;;  %p230_p10 = scmp.lt.s32.totalorder %s224_s24, %s224_s24 }
  0x16   :  { %v30_v3 = vadd.s32 128, %v29_v2  ;;  %v35_v4 = vmul.u32 512, %v27_v1  ;;  %v31_v5 = vadd.s32 256, %v29_v2  ;;  %v32_v6 = vadd.s32 384, %v29_v2 }
  0x17   :  { %p231_p11 = por %p230_p10, %p229_p9 }
  0x18   :  { %v36_v7 = vadd.s32 %v35_v4, %v29_v2  ;;  %v37_v8 = vadd.s32 %v35_v4, %v30_v3  ;;  %v38_v9 = vadd.s32 %v35_v4, %v31_v5  ;;  %v39_v10 = vadd.s32 %v35_v4, %v32_v6 }
  0x19   :  { %p232_p12 = pnand %p231_p11, %p225_p8 }
  0x1a   :  { %v42_v12 = vmul.u32 2, %v36_v7  ;;  %v43_v13 = vmul.u32 2, %v37_v8 }
  0x1b   :  { %v44_v14 = vmul.u32 2, %v38_v9  ;;  %v45_v15 = vmul.u32 2, %v39_v10 }
  0x1c   :  { %v47_v16 = vadd.s32 %v46_v11, %v42_v12  ;;  %v48_v17 = vadd.s32 %v46_v11, %v43_v13 }
  0x1d   :  { %v49_v18 = vadd.s32 %v46_v11, %v44_v14  ;;  %v50_v19 = vadd.s32 %v46_v11, %v45_v15 }
  0x1e   :  { %v51_v20 = vshrl.u32 %v47_v16, 16  ;;  %v52_v21 = vshrl.u32 %v48_v17, 16  ;;  %v83_v22 = vadd.s32 1, %v47_v16  ;;  %v84_v23 = vadd.s32 1, %v48_v17 }
  0x1f   :  { %v53_v24 = vshrl.u32 %v49_v18, 16  ;;  %v54_v25 = vshrl.u32 %v50_v19, 16  ;;  %v85_v26 = vadd.s32 1, %v49_v18  ;;  %v86_v27 = vadd.s32 1, %v50_v19 }
  0x20   :  { %v55_v28 = vxor.u32 %v51_v20, %v47_v16  ;;  %v56_v29 = vxor.u32 %v52_v21, %v48_v17  ;;  %v87_v30 = vshrl.u32 %v83_v22, 16  ;;  %v88_v31 = vshrl.u32 %v84_v23, 16 }
  0x21   :  { %v57_v32 = vxor.u32 %v53_v24, %v49_v18  ;;  %v58_v33 = vxor.u32 %v54_v25, %v50_v19  ;;  %v89_v34 = vshrl.u32 %v85_v26, 16  ;;  %v90_v35 = vshrl.u32 %v86_v27, 16 }
  0x22   :  { %v59_v36 = vmul.u32 2146121005, %v55_v28  ;;  %v60_v37 = vmul.u32 2146121005, %v56_v29  ;;  %v91_v38 = vxor.u32 %v87_v30, %v83_v22  ;;  %v92_v39 = vxor.u32 %v88_v31, %v84_v23 }
  0x23   :  { %v61_v40 = vmul.u32 2146121005, %v57_v32  ;;  %v62_v41 = vmul.u32 2146121005, %v58_v33  ;;  %v93_v42 = vxor.u32 %v89_v34, %v85_v26  ;;  %v94_v43 = vxor.u32 %v90_v35, %v86_v27 }
  0x24   :  { %v63_v44 = vshrl.u32 %v59_v36, 15  ;;  %v64_v45 = vshrl.u32 %v60_v37, 15  ;;  %v95_v46 = vmul.u32 2146121005, %v91_v38  ;;  %v96_v47 = vmul.u32 2146121005, %v92_v39 }
  0x25   :  { %v65_v48 = vshrl.u32 %v61_v40, 15  ;;  %v66_v49 = vshrl.u32 %v62_v41, 15  ;;  %v97_v50 = vmul.u32 2146121005, %v93_v42  ;;  %v98_v51 = vmul.u32 2146121005, %v94_v43 }
  0x26   :  { %v67_v52 = vxor.u32 %v63_v44, %v59_v36  ;;  %v68_v53 = vxor.u32 %v64_v45, %v60_v37  ;;  %v99_v54 = vshrl.u32 %v95_v46, 15  ;;  %v100_v55 = vshrl.u32 %v96_v47, 15 }
  0x27   :  { %v69_v56 = vxor.u32 %v65_v48, %v61_v40  ;;  %v70_v57 = vxor.u32 %v66_v49, %v62_v41  ;;  %v101_v58 = vshrl.u32 %v97_v50, 15  ;;  %v102_v59 = vshrl.u32 %v98_v51, 15 }
  0x28   :  { %v71_v60 = vmul.u32 2221713035, %v67_v52  ;;  %v72_v61 = vmul.u32 2221713035, %v68_v53  ;;  %v103_v62 = vxor.u32 %v99_v54, %v95_v46  ;;  %v104_v63 = vxor.u32 %v100_v55, %v96_v47 }
  0x29   :  { %v73_v0 = vmul.u32 2221713035, %v69_v56  ;;  %v74_v1 = vmul.u32 2221713035, %v70_v57  ;;  %v105_v2 = vxor.u32 %v101_v58, %v97_v50  ;;  %v106_v3 = vxor.u32 %v102_v59, %v98_v51 }
  0x2a   :  { %v75_v4 = vshrl.u32 %v71_v60, 16  ;;  %v76_v5 = vshrl.u32 %v72_v61, 16  ;;  %v107_v6 = vmul.u32 2221713035, %v103_v62  ;;  %v108_v7 = vmul.u32 2221713035, %v104_v63 }
  0x2b   :  { %v77_v8 = vshrl.u32 %v73_v0, 16  ;;  %v78_v9 = vshrl.u32 %v74_v1, 16  ;;  %v109_v10 = vmul.u32 2221713035, %v105_v2  ;;  %v110_v11 = vmul.u32 2221713035, %v106_v3 }
  0x2c   :  { %v79_v12 = vxor.u32 %v75_v4, %v71_v60  ;;  %v80_v13 = vxor.u32 %v76_v5, %v72_v61  ;;  %v111_v14 = vshrl.u32 %v107_v6, 16  ;;  %v112_v15 = vshrl.u32 %v108_v7, 16  ;;  %v159_v4 = vld [vmem:[#allocation3] sm:$0xff] }
  0x2d   :  { %v81_v16 = vxor.u32 %v77_v8, %v73_v0  ;;  %v82_v17 = vxor.u32 %v78_v9, %v74_v1  ;;  %v113_v18 = vshrl.u32 %v109_v10, 16  ;;  %v114_v19 = vshrl.u32 %v110_v11, 16 }
  0x2e   :  { %v115_v20 = vxor.u32 %v111_v14, %v107_v6  ;;  %v116_v21 = vxor.u32 %v112_v15, %v108_v7  ;;  %v119_v22 = vand.u32 65535, %v79_v12  ;;  %v120_v23 = vand.u32 65535, %v80_v13 }
  0x2f   :  { %v123_v24 = vshrl.u32 %v79_v12, 16  ;;  %v124_v25 = vshrl.u32 %v80_v13, 16  ;;  %v117_v26 = vxor.u32 %v113_v18, %v109_v10  ;;  %v118_v27 = vxor.u32 %v114_v19, %v110_v11  ;;  %v160_v11 = vld [vmem:[#allocation3 + $0x8] sm:$0xff] }
  0x30   :  { %v131_v28 = vand.u32 65535, %v115_v20  ;;  %v132_v29 = vand.u32 65535, %v116_v21  ;;  %v139_v30 = vshrl.u32 %v115_v20, 16  ;;  %v140_v31 = vshrl.u32 %v116_v21, 16 }
  0x31   :  { %v127_v32 = vadd.s32 %v123_v24, %v119_v22  ;;  %v128_v33 = vadd.s32 %v124_v25, %v120_v23  ;;  %v121_v34 = vand.u32 65535, %v81_v16  ;;  %v122_v35 = vand.u32 65535, %v82_v17 }
  0x32   :  { %v125_v36 = vshrl.u32 %v81_v16, 16  ;;  %v126_v37 = vshrl.u32 %v82_v17, 16  ;;  %v133_v38 = vand.u32 65535, %v117_v26  ;;  %v134_v39 = vand.u32 65535, %v118_v27 }
  0x33   :  { %v135_v40 = vadd.s32 %v131_v28, %v127_v32  ;;  %v136_v41 = vadd.s32 %v132_v29, %v128_v33  ;;  %v141_v44 = vshrl.u32 %v117_v26, 16  ;;  %v142_v45 = vshrl.u32 %v118_v27, 16 }
  0x34   :  { %v129_v42 = vadd.s32 %v125_v36, %v121_v34  ;;  %v130_v43 = vadd.s32 %v126_v37, %v122_v35 }
  0x35   :  { %v143_v46 = vadd.s32 %v139_v30, %v135_v40  ;;  %v144_v47 = vadd.s32 %v140_v31, %v136_v41 }
  0x36   :  { %v137_v48 = vadd.s32 %v133_v38, %v129_v42  ;;  %v138_v49 = vadd.s32 %v134_v39, %v130_v43 }
  0x37   :  { %v147_v50 = vcvt.s32.f32 %v143_v46  ;;  %v148_v51 = vcvt.s32.f32 %v144_v47 }
  0x38   :  { %v145_v52 = vadd.s32 %v141_v44, %v137_v48  ;;  %v146_v53 = vadd.s32 %v142_v45, %v138_v49 }
  0x39   :  { %v196_v54 = vadd.f32 -131070.0, %v147_v50  ;;  %v197_v55 = vadd.f32 -131070.0, %v148_v51 }
  0x3a   :  { %v149_v56 = vcvt.s32.f32 %v145_v52  ;;  %v150_v57 = vcvt.s32.f32 %v146_v53 }
  0x3b   :  { %v155_v58 = vmul.f32 2.6428997e-05, %v196_v54  ;;  %v156_v59 = vmul.f32 2.6428997e-05, %v197_v55 }
  0x3c   :  { %v198_v60 = vadd.f32 -131070.0, %v149_v56  ;;  %v199_v61 = vadd.f32 -131070.0, %v150_v57 }
  0x3d   :  { %v161_v62 = vmul.f32 0.1, %v155_v58  ;;  %v162_v63 = vmul.f32 0.1, %v156_v59 }
  0x3e   :  { %v157_v0 = vmul.f32 2.6428997e-05, %v198_v60  ;;  %v158_v1 = vmul.f32 2.6428997e-05, %v199_v61 }
  0x3f   :  { %v165_v2 = vadd.f32 1.0, %v161_v62  ;;  %v166_v3 = vadd.f32 1.0, %v162_v63 }
  0x40   :  { %v163_v5 = vmul.f32 0.1, %v157_v0  ;;  %v164_v6 = vmul.f32 0.1, %v158_v1 }
  0x41   :  { %v173_v7 = vcombine.low %v165_v2, %v166_v3 }
  0x42   :  { %v167_v8 = vadd.f32 1.0, %v163_v5  ;;  %v168_v9 = vadd.f32 1.0, %v164_v6 }
  0x43   :  { %v177_v10 = vmul.f32 %v173_v7, %v159_v4 }
  0x44   :  { %v174_v12 = vcombine.low %v167_v8, %v168_v9 }
  0x45   :  { %179 = vst [vmem:[#allocation6] sm:$0xff] %v177_v10 }
  0x46   :  { %v178_v13 = vmul.f32 %v174_v12, %v160_v11 }
  0x48   :  { %180 = vst [vmem:[#allocation6 + $0x8] sm:$0xff] %v178_v13 }
  0x49   :  { %235 = shalt.err (!%p232_p12)
}
  0x4a   :  { %s236_s27 = scalar_lea.hbm %s296_s2, 256 }
  0x4b   :  { %p237_p13 = scmp.ne.s32.totalorder %s296_s2, %s236_s27  ;;  %p240_p0 = scmp.lt.u32.totalorder %s236_s27, %s296_s2 }
  0x4d   :  { %p242_p1 = pnand %p240_p0, %p237_p13 }
  0x4f   :  { %245 = shalt.err (!%p242_p1)
}
  0x50   :  { %190 = dma.vmem_to_hbm [thread:$0]  %s188_s1, 256, %s296_s2, [#allocation5]  }
  0x51   :  { %248 = dma.done.wait [#allocation5], 256  }
  0x52   :  { %249 = vsyncadd [#allocation5], 4294967040 }
  0x53   :  { %194 = vsyncpa [#allocation4], 1 }
  0x54   :  { %195 = vsyncpa [#allocation5], 1 }

</bundles_post_ra>
